<compile_context>
chip_gen: v7x
topology: tpu7x:2x2x1
jax: 0.10.0
libtpu: 0.0.40
codegen_flags: <defaults>
</compile_context>

<pallas_src>
import functools

import jax
import jax.numpy as jnp
from jax import lax
from jax.experimental import pallas as pl
from jax.experimental.pallas import tpu as pltpu


def _round_up(x, m):
    return ((x + m - 1) // m) * m


def _choose_tile_rows(batch, c_pad, itemsize):
    # Keep double-buffered sim tiles well under the scoped-VMEM default on
    # every generation (v5e: 16 MiB, v6e: 32 MiB, v7x: 32 MiB scoped/64 MiB
    # physical). 512 rows is the measured sweet spot for mem-bound kernels.
    budget_bytes = 8 * 1024 * 1024
    max_rows = max(8, budget_bytes // (2 * c_pad * itemsize))
    tile = min(512, max_rows)
    tile = max(8, (tile // 8) * 8)
    tile = min(tile, _round_up(batch, 8))
    return int(tile)


def _dfploss_kernel(sim_ref, dis_tgt_ref, tgt_ref,
                    total_ref, simloss_ref, distloss_ref,
                    *, alpha, true_batch):
    pid = pl.program_id(0)

    @pl.when(pid == 0)
    def _init():
        total_ref[0, 0] = jnp.float32(0.0)
        simloss_ref[0, 0] = jnp.float32(0.0)
        distloss_ref[0, 0] = jnp.float32(0.0)

    sim = sim_ref[...].astype(jnp.float32)       # [T, Cp]  (lane-padded logits)
    d_t = dis_tgt_ref[...].astype(jnp.float32)   # [T, 1]   (dis gathered @target)
    tgt = tgt_ref[...]                           # [T, 1]   int32, -1 == padding

    T, Cp = sim.shape
    classes = lax.broadcasted_iota(jnp.int32, (T, Cp), 1)
    mask = (classes == tgt).astype(jnp.float32)          # one-hot (zero for pads)
    row_valid = (tgt >= 0).astype(jnp.float32)           # [T, 1]

    # Cross entropy, numerically stable log-sum-exp. Pad columns hold -1e30 so
    # exp(pad - max) == 0 and mask == 0 keeps them out of tgt_logit (finite
    # padding avoids -inf * 0 = NaN).
    row_max = jnp.max(sim, axis=1, keepdims=True)
    lse = jnp.log(jnp.sum(jnp.exp(sim - row_max), axis=1, keepdims=True)) + row_max
    tgt_logit = jnp.sum(sim * mask, axis=1, keepdims=True)
    ce_sum = jnp.sum((lse - tgt_logit) * row_valid)

    # Distance term: 0.5 * d^2 at the target class (already gathered).
    dist_sum = jnp.sum(0.5 * d_t * d_t * row_valid)

    simloss_ref[0, 0] += ce_sum
    distloss_ref[0, 0] += dist_sum

    @pl.when(pid == pl.num_programs(0) - 1)
    def _finalize():
        inv_b = jnp.float32(1.0 / true_batch)
        s = simloss_ref[0, 0] * inv_b
        d = distloss_ref[0, 0] * (jnp.float32(alpha) * inv_b)
        simloss_ref[0, 0] = s
        distloss_ref[0, 0] = d
        total_ref[0, 0] = s + d


def dfp_loss(sim_fea2cen, dis_fea2cen, targets, alpha=1.0):
    """Pallas implementation of DFPLoss.forward.

    sim_fea2cen: [B, C] float logits
    dis_fea2cen: [B, C] float distances
    targets:     [B]    int class labels
    returns dict with 'total', 'similarity', 'distance' (scalar f32 each)
    """
    B, C = sim_fea2cen.shape
    c_pad = _round_up(C, 128)
    itemsize = jnp.dtype(sim_fea2cen.dtype).itemsize
    tile_b = _choose_tile_rows(B, c_pad, itemsize)
    b_pad = _round_up(B, tile_b)
    num_tiles = b_pad // tile_b

    tgt = targets.astype(jnp.int32)

    # Only one distance per row is ever used -> gather in the wrapper so the
    # kernel never streams the full dis matrix.
    dis_tgt = jnp.take_along_axis(
        dis_fea2cen.astype(jnp.float32), tgt[:, None], axis=1)     # [B, 1]

    neg = jnp.asarray(-1e30, dtype=sim_fea2cen.dtype)
    sim_p = jnp.full((b_pad, c_pad), neg, dtype=sim_fea2cen.dtype)
    sim_p = sim_p.at[:B, :C].set(sim_fea2cen)
    dis_p = jnp.zeros((b_pad, 1), jnp.float32).at[:B, :].set(dis_tgt)
    tgt_p = jnp.full((b_pad, 1), -1, jnp.int32).at[:B, 0].set(tgt)

    kernel = functools.partial(_dfploss_kernel, alpha=float(alpha),
                               true_batch=float(B))

    out_shapes = (
        jax.ShapeDtypeStruct((1, 1), jnp.float32),  # total
        jax.ShapeDtypeStruct((1, 1), jnp.float32),  # similarity
        jax.ShapeDtypeStruct((1, 1), jnp.float32),  # distance
    )
    smem_scalar = pl.BlockSpec((1, 1), lambda i: (0, 0),
                               memory_space=pltpu.SMEM)

    bytes_accessed = b_pad * c_pad * itemsize + b_pad * 4 + b_pad * 4 + 3 * 4
    cost = pl.CostEstimate(flops=6 * b_pad * c_pad,
                           transcendentals=b_pad * c_pad + b_pad,
                           bytes_accessed=bytes_accessed)

    total, sim_l, dist_l = pl.pallas_call(
        kernel,
        out_shape=out_shapes,
        grid=(num_tiles,),
        in_specs=[
            pl.BlockSpec((tile_b, c_pad), lambda i: (i, 0)),
            pl.BlockSpec((tile_b, 1), lambda i: (i, 0)),
            pl.BlockSpec((tile_b, 1), lambda i: (i, 0)),
        ],
        out_specs=(smem_scalar, smem_scalar, smem_scalar),
        compiler_params=pltpu.CompilerParams(
            dimension_semantics=("arbitrary",),   # reduction into resident outs
            vmem_limit_bytes=32 * 1024 * 1024),
        cost_estimate=cost,
    )(sim_p, dis_p, tgt_p)

    return {
        "total": total[0, 0],
        "similarity": sim_l[0, 0],
        "distance": dist_l[0, 0],
    }


def _dfp_loss_ref(sim, dis, targets, alpha=1.0):
    """Pure-JAX reference for validation."""
    B, C = sim.shape
    sim = sim.astype(jnp.float32)
    logp = jax.nn.log_softmax(sim, axis=1)
    ce = -jnp.take_along_axis(logp, targets[:, None], axis=1).squeeze(1)
    loss_sim = jnp.mean(ce)
    dist = 0.5 * dis.astype(jnp.float32) ** 2
    mask = (targets[:, None] == jnp.arange(C)[None, :]).astype(jnp.float32)
    loss_dist = alpha * jnp.sum(dist * mask) / B
    return loss_sim + loss_dist, loss_sim, loss_dist


if __name__ == "__main__":
    key = jax.random.PRNGKey(0)
    k1, k2, k3, k4, k5, k6 = jax.random.split(key, 6)

    # Test 1: small aligned-ish shape (batch=8, classes=16).
    B, C = 8, 16
    sim_fea2cen = jax.random.normal(k1, (B, C), dtype=jnp.float32)
    dis_fea2cen = jax.random.uniform(k2, (B, C), dtype=jnp.float32) * 3.0
    targets = jax.random.randint(k3, (B,), 0, C, dtype=jnp.int32)

    out = dfp_loss(sim_fea2cen, dis_fea2cen, targets, alpha=1.0)
    jax.block_until_ready(out)

    ref_total, ref_sim, ref_dist = _dfp_loss_ref(
        sim_fea2cen, dis_fea2cen, targets, alpha=1.0)
    assert jnp.allclose(out["total"], ref_total, atol=1e-5, rtol=1e-5)
    assert jnp.allclose(out["similarity"], ref_sim, atol=1e-5, rtol=1e-5)
    assert jnp.allclose(out["distance"], ref_dist, atol=1e-5, rtol=1e-5)

    # Test 2: non-aligned shapes exercise row + lane padding and masking.
    B2, C2 = 10, 10
    sim2 = jax.random.normal(k4, (B2, C2), dtype=jnp.float32)
    dis2 = jax.random.uniform(k5, (B2, C2), dtype=jnp.float32) * 2.0
    tgt2 = jax.random.randint(k6, (B2,), 0, C2, dtype=jnp.int32)

    out2 = dfp_loss(sim2, dis2, tgt2, alpha=0.5)
    jax.block_until_ready(out2)

    rt2, rs2, rd2 = _dfp_loss_ref(sim2, dis2, tgt2, alpha=0.5)
    assert jnp.allclose(out2["total"], rt2, atol=1e-5, rtol=1e-5)
    assert jnp.allclose(out2["similarity"], rs2, atol=1e-5, rtol=1e-5)
    assert jnp.allclose(out2["distance"], rd2, atol=1e-5, rtol=1e-5)

    print("KERNEL_OK")
</pallas_src>

<mosaic_0001>
module attributes {stable_mosaic.version = 11 : i64} {
  func.func @_dfploss_kernel(%arg0: i32, %arg1: memref<8x128xf32, #tpu.memory_space<vmem>>, %arg2: memref<8x1xf32, #tpu.memory_space<vmem>>, %arg3: memref<8x1xi32, #tpu.memory_space<vmem>>, %arg4: memref<1x1xf32, #tpu.memory_space<smem>>, %arg5: memref<1x1xf32, #tpu.memory_space<smem>>, %arg6: memref<1x1xf32, #tpu.memory_space<smem>>) attributes {dimension_semantics = [#tpu.dimension_semantics<arbitrary>], iteration_bounds = array<i64: 1>, scalar_prefetch = 0 : i64, scratch_operands = 0 : i64, tpu.core_type = #tpu.core_type<tc>, window_params = [{transform_indices = @transform_0, window_bounds = array<i64: 8, 128>}, {transform_indices = @transform_1, window_bounds = array<i64: 8, 1>}, {transform_indices = @transform_2, window_bounds = array<i64: 8, 1>}, {transform_indices = @transform_3, window_bounds = array<i64: 1, 1>}, {transform_indices = @transform_4, window_bounds = array<i64: 1, 1>}, {transform_indices = @transform_5, window_bounds = array<i64: 1, 1>}]} {
    %c0_i32 = arith.constant 0 : i32
    %0 = arith.cmpi eq, %arg0, %c0_i32 : i32
    %1 = arith.extui %0 : i1 to i32
    %c0_i32_0 = arith.constant 0 : i32
    %2 = arith.cmpi ne, %1, %c0_i32_0 : i32
    scf.if %2 {
      %cst_22 = arith.constant 0.000000e+00 : f32
      %c0_23 = arith.constant 0 : index
      %c0_24 = arith.constant 0 : index
      %50 = memref.load %arg4[%c0_23, %c0_24] : memref<1x1xf32, #tpu.memory_space<smem>>
      memref.store %cst_22, %arg4[%c0_23, %c0_24] : memref<1x1xf32, #tpu.memory_space<smem>>
      %cst_25 = arith.constant 0.000000e+00 : f32
      %c0_26 = arith.constant 0 : index
      %c0_27 = arith.constant 0 : index
      %51 = memref.load %arg5[%c0_26, %c0_27] : memref<1x1xf32, #tpu.memory_space<smem>>
      memref.store %cst_25, %arg5[%c0_26, %c0_27] : memref<1x1xf32, #tpu.memory_space<smem>>
      %cst_28 = arith.constant 0.000000e+00 : f32
      %c0_29 = arith.constant 0 : index
      %c0_30 = arith.constant 0 : index
      %52 = memref.load %arg6[%c0_29, %c0_30] : memref<1x1xf32, #tpu.memory_space<smem>>
      memref.store %cst_28, %arg6[%c0_29, %c0_30] : memref<1x1xf32, #tpu.memory_space<smem>>
    } else {
    }
    %c0 = arith.constant 0 : index
    %c0_1 = arith.constant 0 : index
    %3 = vector.load %arg1[%c0, %c0_1] : memref<8x128xf32, #tpu.memory_space<vmem>>, vector<8x128xf32>
    %c0_2 = arith.constant 0 : index
    %c0_3 = arith.constant 0 : index
    %4 = vector.load %arg2[%c0_2, %c0_3] : memref<8x1xf32, #tpu.memory_space<vmem>>, vector<8x1xf32>
    %c0_4 = arith.constant 0 : index
    %c0_5 = arith.constant 0 : index
    %5 = vector.load %arg3[%c0_4, %c0_5] : memref<8x1xi32, #tpu.memory_space<vmem>>, vector<8x1xi32>
    %6 = tpu.iota {dimensions = array<i32: 1>} : vector<8x128xi32>
    %7 = vector.broadcast %5 : vector<8x1xi32> to vector<8x128xi32>
    %8 = arith.cmpi eq, %6, %7 : vector<8x128xi32>
    %9 = arith.extui %8 : vector<8x128xi1> to vector<8x128xi32>
    %10 = arith.sitofp %9 : vector<8x128xi32> to vector<8x128xf32>
    %c0_i32_6 = arith.constant 0 : i32
    %11 = vector.broadcast %c0_i32_6 : i32 to vector<8x1xi32>
    %12 = arith.cmpi sge, %5, %11 : vector<8x1xi32>
    %13 = arith.extui %12 : vector<8x1xi1> to vector<8x1xi32>
    %14 = arith.sitofp %13 : vector<8x1xi32> to vector<8x1xf32>
    %cst = arith.constant dense<0xFF800000> : vector<8xf32>
    %15 = vector.multi_reduction <maximumf>, %3, %cst [1] : vector<8x128xf32> to vector<8xf32>
    %16 = vector.shape_cast %15 : vector<8xf32> to vector<8x1xf32>
    %17 = vector.broadcast %16 : vector<8x1xf32> to vector<8x128xf32>
    %18 = arith.subf %3, %17 : vector<8x128xf32>
    %19 = math.exp %18 : vector<8x128xf32>
    %cst_7 = arith.constant dense<0.000000e+00> : vector<8xf32>
    %20 = vector.multi_reduction <add>, %19, %cst_7 [1] : vector<8x128xf32> to vector<8xf32>
    %21 = vector.shape_cast %20 : vector<8xf32> to vector<8x1xf32>
    %22 = math.log %21 : vector<8x1xf32>
    %23 = arith.addf %22, %16 : vector<8x1xf32>
    %24 = arith.mulf %3, %10 : vector<8x128xf32>
    %cst_8 = arith.constant dense<0.000000e+00> : vector<8xf32>
    %25 = vector.multi_reduction <add>, %24, %cst_8 [1] : vector<8x128xf32> to vector<8xf32>
    %26 = vector.shape_cast %25 : vector<8xf32> to vector<8x1xf32>
    %27 = arith.subf %23, %26 : vector<8x1xf32>
    %28 = arith.mulf %27, %14 : vector<8x1xf32>
    %29 = vector.shape_cast %28 : vector<8x1xf32> to vector<1x8x1xf32>
    %cst_9 = arith.constant dense<0.000000e+00> : vector<1xf32>
    %30 = vector.multi_reduction <add>, %29, %cst_9 [1, 2] : vector<1x8x1xf32> to vector<1xf32>
    %31 = vector.shape_cast %30 : vector<1xf32> to vector<1x1x1xf32>
    %32 = vector.extract %31[0, 0, 0] : f32 from vector<1x1x1xf32>
    %cst_10 = arith.constant 5.000000e-01 : f32
    %33 = vector.broadcast %cst_10 : f32 to vector<8x1xf32>
    %34 = arith.mulf %33, %4 : vector<8x1xf32>
    %35 = arith.mulf %34, %4 : vector<8x1xf32>
    %36 = arith.mulf %35, %14 : vector<8x1xf32>
    %37 = vector.shape_cast %36 : vector<8x1xf32> to vector<1x8x1xf32>
    %cst_11 = arith.constant dense<0.000000e+00> : vector<1xf32>
    %38 = vector.multi_reduction <add>, %37, %cst_11 [1, 2] : vector<1x8x1xf32> to vector<1xf32>
    %39 = vector.shape_cast %38 : vector<1xf32> to vector<1x1x1xf32>
    %40 = vector.extract %39[0, 0, 0] : f32 from vector<1x1x1xf32>
    %c0_12 = arith.constant 0 : index
    %c0_13 = arith.constant 0 : index
    %41 = memref.load %arg5[%c0_12, %c0_13] : memref<1x1xf32, #tpu.memory_space<smem>>
    %42 = arith.addf %41, %32 : f32
    %c0_14 = arith.constant 0 : index
    %c0_15 = arith.constant 0 : index
    %43 = memref.load %arg5[%c0_14, %c0_15] : memref<1x1xf32, #tpu.memory_space<smem>>
    memref.store %42, %arg5[%c0_14, %c0_15] : memref<1x1xf32, #tpu.memory_space<smem>>
    %c0_16 = arith.constant 0 : index
    %c0_17 = arith.constant 0 : index
    %44 = memref.load %arg6[%c0_16, %c0_17] : memref<1x1xf32, #tpu.memory_space<smem>>
    %45 = arith.addf %44, %40 : f32
    %c0_18 = arith.constant 0 : index
    %c0_19 = arith.constant 0 : index
    %46 = memref.load %arg6[%c0_18, %c0_19] : memref<1x1xf32, #tpu.memory_space<smem>>
    memref.store %45, %arg6[%c0_18, %c0_19] : memref<1x1xf32, #tpu.memory_space<smem>>
    %c0_i32_20 = arith.constant 0 : i32
    %47 = arith.cmpi eq, %arg0, %c0_i32_20 : i32
    %48 = arith.extui %47 : i1 to i32
    %c0_i32_21 = arith.constant 0 : i32
    %49 = arith.cmpi ne, %48, %c0_i32_21 : i32
    scf.if %49 {
      %c0_22 = arith.constant 0 : index
      %c0_23 = arith.constant 0 : index
      %50 = memref.load %arg5[%c0_22, %c0_23] : memref<1x1xf32, #tpu.memory_space<smem>>
      %cst_24 = arith.constant 1.250000e-01 : f32
      %51 = arith.mulf %50, %cst_24 : f32
      %c0_25 = arith.constant 0 : index
      %c0_26 = arith.constant 0 : index
      %52 = memref.load %arg6[%c0_25, %c0_26] : memref<1x1xf32, #tpu.memory_space<smem>>
      %cst_27 = arith.constant 1.000000e+00 : f32
      %cst_28 = arith.constant 1.250000e-01 : f32
      %53 = arith.mulf %cst_27, %cst_28 : f32
      %54 = arith.mulf %52, %53 : f32
      %c0_29 = arith.constant 0 : index
      %c0_30 = arith.constant 0 : index
      %55 = memref.load %arg5[%c0_29, %c0_30] : memref<1x1xf32, #tpu.memory_space<smem>>
      memref.store %51, %arg5[%c0_29, %c0_30] : memref<1x1xf32, #tpu.memory_space<smem>>
      %c0_31 = arith.constant 0 : index
      %c0_32 = arith.constant 0 : index
      %56 = memref.load %arg6[%c0_31, %c0_32] : memref<1x1xf32, #tpu.memory_space<smem>>
      memref.store %54, %arg6[%c0_31, %c0_32] : memref<1x1xf32, #tpu.memory_space<smem>>
      %57 = arith.addf %51, %54 : f32
      %c0_33 = arith.constant 0 : index
      %c0_34 = arith.constant 0 : index
      %58 = memref.load %arg4[%c0_33, %c0_34] : memref<1x1xf32, #tpu.memory_space<smem>>
      memref.store %57, %arg4[%c0_33, %c0_34] : memref<1x1xf32, #tpu.memory_space<smem>>
    } else {
    }
    return
  }
  func.func @transform_0(%arg0: i32) -> (i32, i32) {
    %c0_i32 = arith.constant 0 : i32
    %c0_i32_0 = arith.constant 0 : i32
    return %arg0, %c0_i32 : i32, i32
  }
  func.func @transform_1(%arg0: i32) -> (i32, i32) {
    %c0_i32 = arith.constant 0 : i32
    %c0_i32_0 = arith.constant 0 : i32
    return %arg0, %c0_i32 : i32, i32
  }
  func.func @transform_2(%arg0: i32) -> (i32, i32) {
    %c0_i32 = arith.constant 0 : i32
    %c0_i32_0 = arith.constant 0 : i32
    return %arg0, %c0_i32 : i32, i32
  }
  func.func @transform_3(%arg0: i32) -> (i32, i32) {
    %c0_i32 = arith.constant 0 : i32
    %c0_i32_0 = arith.constant 0 : i32
    %c0_i32_1 = arith.constant 0 : i32
    return %c0_i32, %c0_i32_0 : i32, i32
  }
  func.func @transform_4(%arg0: i32) -> (i32, i32) {
    %c0_i32 = arith.constant 0 : i32
    %c0_i32_0 = arith.constant 0 : i32
    %c0_i32_1 = arith.constant 0 : i32
    return %c0_i32, %c0_i32_0 : i32, i32
  }
  func.func @transform_5(%arg0: i32) -> (i32, i32) {
    %c0_i32 = arith.constant 0 : i32
    %c0_i32_0 = arith.constant 0 : i32
    %c0_i32_1 = arith.constant 0 : i32
    return %c0_i32, %c0_i32_0 : i32, i32
  }
}

</mosaic_0001>

<bundles_post_ra>
// kernel: tpu_custom_call.1
= control target key start
LH: loop header
LB: loop body
LE: loop exit
PB: predicated region body
PF: predicated region fallthrough
CT: control target
= control target key end

     0   :  { %11 = vsyncpa [#allocation3], 0  ;;  %s269_s0 = inlined_call_operand.vmem [shape: f32[8,128], index: 0, kind: input, shape index: {}]   ;;  %s270_s1 = inlined_call_operand.vmem [shape: f32[8,1], index: 1, kind: input, shape index: {}]   ;;  %s271_s2 = inlined_call_operand.vmem [shape: s32[8,1], index: 2, kind: input, shape index: {}]   ;;  %s272_s3 = inlined_call_operand.hbm [shape: f32[1,1], index: 3, kind: output, shape index: {0}]   ;;  %s273_s4 = inlined_call_operand.hbm [shape: f32[1,1], index: 4, kind: output, shape index: {1}]   ;;  %s274_s5 = inlined_call_operand.hbm [shape: f32[1,1], index: 5, kind: output, shape index: {2}]  }
   0x1   :  { %v29_v0 = vld [vmem:[%s269_s0] sm:$0xff] }
   0x2   :  { %12 = vsyncpa [#allocation5], 0  ;;  %43 = vmax.xlane.f32.xlu0 %v29_v0  ;;  %v189_v1 = vmov 0   ;;  %v31_v2 = vld [vmem:[%s271_s2] sm:$0xff]  ;;  %v32_v5 = vlaneseq  ;;  %v190_v9 = vmov 0.0   ;;  %vm58_vm2 = vcmask 7168  }
   0x3   :  { %150 = vset.pattern.permute.xlu0 %v189_v1  ;;  %vm40_vm1 = vcmp.ge.s32.totalorder %v31_v2, 0  ;;  %v30_v15 = vld [vmem:[%s270_s1] sm:$0xff]  ;;  %s155_s26 = scalar_lea.hbm %s273_s4, 16 }
   0x4   :  { %v33_v7 = vand.u32 127, %v32_v5  ;;  %v139_v13 = vsel %vm40_vm1, 1.0, %v190_v9  ;;  %v69_v16 = vmul.f32 0.5, %v30_v15  ;;  %p156_p0 = scmp.ne.s32.totalorder %s273_s4, %s155_s26  ;;  %p159_p1 = scmp.lt.u32.totalorder %s155_s26, %s273_s4 }
   0x6   :  { %v70_v21 = vmul.f32 %v69_v16, %v30_v15  ;;  %p161_p2 = pnand %p159_p1, %p156_p0 }
   0x8   :  { %v71_v24 = vmul.f32 %v139_v13, %v70_v21 }
   0xa   :  { %v72_v26 = vsel %vm58_vm2, %v71_v24, 0.0 }
  0x18   :  { %35 = vperm.xlu0 %150, %v31_v2  }
  0x8f   :  { %v44_v3 = vpop.xlane.xlu0 %43 }
  0x90   :  { %v45_v4 = vsub.f32 %v29_v0, %v44_v3 }
  0x92   :  { %v46_v6 = vmul.f32 1.442695, %v45_v4 }
  0x94   :  { %151 = vpow2.f32 %v46_v6 }
  0x97   :  { %v36_v8 = vpop.permute.xlu0 %35 }
  0x98   :  { %vm37_vm0 = vcmp.eq.s32.totalorder %v33_v7, %v36_v8 }
  0x99   :  { %v138_v10 = vsel %vm37_vm0, 1.0, %v190_v9 }
  0x9a   :  { %v53_v12 = vmul.f32 %v138_v10, %v29_v0 }
  0x9e   :  { %v152_v11 = vpop.eup %151 }
  0x9f   :  { %48 = vadd.xlane.f32.xlu1 %v152_v11 }
  0xa3   :  { %54 = vadd.xlane.f32.xlu1 %v53_v12 }
 0x12c   :  { %v49_v14 = vpop.xlane.xlu1 %48 }
 0x12d   :  { %153 = vlog2.f32 %v49_v14 }
 0x130   :  { %v55_v19 = vpop.xlane.xlu1 %54 }
 0x137   :  { %v154_v17 = vpop.eup %153 }
 0x138   :  { %v51_v18 = vmul.f32 0.6931472, %v154_v17 }
 0x13a   :  { %v52_v20 = vadd.f32 %v51_v18, %v44_v3 }
 0x13c   :  { %v56_v22 = vsub.f32 %v52_v20, %v55_v19 }
 0x13e   :  { %v57_v23 = vmul.f32 %v139_v13, %v56_v22 }
 0x140   :  { %v59_v25 = vsel %vm58_vm2, %v57_v23, 0.0 }
 0x141   :  { %60 = vadd.xlane.f32.xlu1 %v59_v25 }
 0x145   :  { %73 = vadd.xlane.f32.xlu1 %v72_v26 }
 0x1ce   :  { %v61_v27 = vpop.xlane.xlu1 %60 }
 0x1cf   :  { %v62_v28 = vrot.slane %v61_v27, 4 }
 0x1d1   :  { %v63_v29 = vadd.f32 %v62_v28, %v61_v27 }
 0x1d2   :  { %v74_v30 = vpop.xlane.xlu1 %73 }
 0x1d3   :  { %v64_v31 = vrot.slane %v63_v29, 2  ;;  %v75_v32 = vrot.slane %v74_v30, 4 }
 0x1d5   :  { %v76_v33 = vadd.f32 %v75_v32, %v74_v30  ;;  %v65_v34 = vadd.f32 %v64_v31, %v63_v29 }
 0x1d7   :  { %v77_v35 = vrot.slane %v76_v33, 2  ;;  %v66_v36 = vrot.slane %v65_v34, 1 }
 0x1d9   :  { %v78_v37 = vadd.f32 %v77_v35, %v76_v33  ;;  %v67_v38 = vadd.f32 %v66_v36, %v65_v34 }
 0x1db   :  { %140 = vpush %v67_v38  ;;  %v79_v39 = vrot.slane %v78_v37, 1 }
 0x1dd   :  { %v80_v40 = vadd.f32 %v79_v39, %v78_v37 }
 0x1df   :  { %142 = vpush %v80_v40 }
 0x20c   :  { %s141_s1 = spop %140 }
 0x20d   :  { %s94_s22 = smul.f32 0.125, %s141_s1 }
 0x20f   :  { %97 = sst [smem:[#allocation4]] %s94_s22 }
 0x210   :  { %s143_s23 = spop %142 }
 0x211   :  { %164 = shalt.err (!%p161_p2)
}
 0x212   :  { %s191_s6 = smov [#allocation4]   ;;  %s96_s9 = smul.f32 0.125, %s143_s23 }
 0x213   :  { %117 = dma.smem_to_hbm %s191_s6, 16, %s273_s4, [#allocation5]  }
 0x214   :  { %s99_s10 = sadd.f32 %s96_s9, %s94_s22  ;;  %s165_s13 = scalar_lea.hbm %s272_s3, 16 }
 0x215   :  { %98 = sst [smem:[#allocation6]] %s96_s9  ;;  %p166_p3 = scmp.ne.s32.totalorder %s272_s3, %s165_s13 }
 0x216   :  { %101 = sst [smem:[#allocation2]] %s99_s10  ;;  %p169_p4 = scmp.lt.u32.totalorder %s165_s13, %s272_s3 }
 0x218   :  { %p171_p5 = pnand %p169_p4, %p166_p3 }
 0x21a   :  { %174 = shalt.err (!%p171_p5)
}
 0x21b   :  { %s192_s18 = smov [#allocation2]   ;;  %s175_s0 = scalar_lea.hbm %s274_s5, 16 }
 0x21c   :  { %109 = dma.smem_to_hbm %s192_s18, 16, %s272_s3, [#allocation3]  }
 0x21d   :  { %p176_p6 = scmp.ne.s32.totalorder %s274_s5, %s175_s0  ;;  %p179_p7 = scmp.lt.u32.totalorder %s175_s0, %s274_s5 }
 0x21f   :  { %p181_p8 = pnand %p179_p7, %p176_p6 }
 0x221   :  { %184 = shalt.err (!%p181_p8)
}
 0x222   :  { %s193_s24 = smov [#allocation6]  }
 0x223   :  { %125 = dma.smem_to_hbm %s193_s24, 16, %s274_s5, [#allocation5]  }
 0x224   :  { %185 = dma.done.wait [#allocation3], 16  }
 0x225   :  { %186 = vsyncadd [#allocation3], 4294967280 }
 0x226   :  { %187 = dma.done.wait [#allocation5], 32  }
 0x227   :  { %188 = vsyncadd [#allocation5], 4294967264 }
 0x228   :  { %135 = sfence }
 0x229   :  { %136 = vsyncpa [#allocation3], 1 }
 0x22a   :  { %137 = vsyncpa [#allocation5], 1 }

</bundles_post_ra>
